<compile_context>
chip_gen: v5e
topology: v5e:2x2
jax: 0.10.0
libtpu: 0.0.40
codegen_flags: <defaults>
</compile_context>

<pallas_src>
import functools

import jax
import jax.numpy as jnp
from jax.experimental import pallas as pl
from jax.experimental.pallas import tpu as pltpu

LN_EPS = 1e-5  # matches torch.nn.LayerNorm default


def _round_up(x, m):
    return ((x + m - 1) // m) * m


def _fused_mlp_kernel(*refs, num_layers, sigmoid, compute_dtype):
    """Fused kernel for the whole layer stack.

    refs = (x_ref, w0, b0, w1, b1, ..., w_{L-1}, b_{L-1}, gamma, beta, o_ref).
    Hidden layers: Linear -> LayerNorm -> ReLU (dropout p=0 / eval => identity).
    Final layer:  Linear (+ optional sigmoid), stored at true output width.
    The activation tile never leaves VMEM between layers.
    """
    x_ref = refs[0]
    o_ref = refs[-1]
    gamma = refs[-3][...]
    beta = refs[-2][...]
    wb = refs[1:1 + 2 * num_layers]

    h = x_ref[...].astype(compute_dtype)  # [TILE_N, C_in] in compute dtype
    for l in range(num_layers):  # trace-time unroll over layers
        w = wb[2 * l][...]       # pre-cast to compute_dtype in the wrapper
        b = wb[2 * l + 1][...]   # f32 (added after f32 accumulation)
        z = jnp.dot(h, w, preferred_element_type=jnp.float32) + b
        if l < num_layers - 1:
            # LayerNorm in f32 on VPU/EUP; single centered pass.
            mu = jnp.mean(z, axis=-1, keepdims=True)
            zc = z - mu
            var = jnp.mean(zc * zc, axis=-1, keepdims=True)
            zn = zc * jax.lax.rsqrt(var + LN_EPS)
            h = jnp.maximum(zn * gamma + beta, 0.0).astype(compute_dtype)
        else:
            if sigmoid:
                z = jax.nn.sigmoid(z)
            o_ref[...] = z.astype(o_ref.dtype)


def fused_mlp_forward(x, weights, biases, gamma, beta, *, sigmoid,
                      compute_dtype=jnp.bfloat16, tile_rows=None):
    """Single pallas_call over a batch-tiled grid with resident parameters."""
    n, cin = x.shape
    num_layers = len(weights)
    cout = weights[-1].shape[1]

    # Pre-cast weights to the MXU compute dtype; keep biases / LN params in f32.
    ws = [w.astype(compute_dtype) for w in weights]
    bs = [b.astype(jnp.float32) for b in biases]
    gamma = gamma.astype(jnp.float32)
    beta = beta.astype(jnp.float32)

    widths = [cin] + [int(w.shape[1]) for w in ws]
    max_w = max(widths)

    # Generation-aware VMEM budget (v5e/v6e: 128 MiB physical; v7x: 64 MiB).
    kind = ""
    try:
        kind = jax.devices()[0].device_kind.lower()
    except Exception:
        pass
    big_vmem = any(tag in kind for tag in ("v2", "v3", "v4", "v5", "v6"))
    vmem_limit = (100 << 20) if big_vmem else (48 << 20)

    x_itemsize = jnp.dtype(x.dtype).itemsize
    cd_itemsize = jnp.dtype(compute_dtype).itemsize

    if tile_rows is None:
        # Byte-budget tile sizing: ~4 MiB of input rows per grid step so the
        # fixed per-step cost is amortized even at narrow feature widths.
        target_tile_bytes = 4 << 20
        by_bytes = target_tile_bytes // max(1, x_itemsize * cin)
        # VMEM cap: double-buffered in/out tiles + a few live temps of max width.
        row_bytes = (2 * x_itemsize * cin + 2 * 4 * cout
                     + 4 * 4 * max_w + 2 * cd_itemsize * max_w)
        by_vmem = (vmem_limit * 3 // 4) // max(1, row_bytes)
        tile_rows = min(by_bytes, by_vmem)
        # Keep >= ~8 grid steps at large N (DMA pipelining + v7x megacore split),
        # but never shrink a tile below 256 rows for that reason.
        tile_rows = min(tile_rows, max(256, pl.cdiv(n, 8)))
        tile_rows = max(8, tile_rows)
    tile_rows = int(max(8, min(_round_up(int(tile_rows), 8), _round_up(n, 8))))

    grid = (pl.cdiv(n, tile_rows),)  # ragged last block; OOB writes are dropped

    # Parameters are block-constant across the grid -> DMA'd once, VMEM-resident.
    params = [a for pair in zip(ws, bs) for a in pair] + [gamma, beta]
    param_specs = [pl.BlockSpec(p.shape, lambda i: (0, 0)) for p in params]

    flops = 2 * n * sum(int(w.shape[0]) * int(w.shape[1]) for w in ws)
    transcendentals = n * ((num_layers - 1) + (cout if sigmoid else 0))
    bytes_accessed = (x_itemsize * n * cin + 4 * n * cout
                      + sum(int(p.size) * jnp.dtype(p.dtype).itemsize
                            for p in params))
    cost = pl.CostEstimate(flops=int(flops),
                           transcendentals=int(transcendentals),
                           bytes_accessed=int(bytes_accessed))

    kernel = functools.partial(_fused_mlp_kernel, num_layers=num_layers,
                               sigmoid=sigmoid, compute_dtype=compute_dtype)

    y = pl.pallas_call(
        kernel,
        out_shape=jax.ShapeDtypeStruct((n, cout), jnp.float32),
        grid=grid,
        in_specs=[pl.BlockSpec((tile_rows, cin), lambda i: (i, 0))] + param_specs,
        out_specs=pl.BlockSpec((tile_rows, cout), lambda i: (i, 0)),
        compiler_params=pltpu.CompilerParams(
            dimension_semantics=("parallel",),   # megacore sharding on v7x
            vmem_limit_bytes=vmem_limit),
        cost_estimate=cost,
    )(x, *params)

    if cout == 1:  # torch .squeeze(-1) semantics
        y = jnp.squeeze(y, axis=-1)
    return y


class KANLayer:
    """JAX/Pallas port of KANLayer (norm='layer', eval mode).

    # TODO(synk): the pykan KAN (B-spline edge activations, grid=3, k=3) is not
    # defined in the spec; its layer stack is approximated by dense Linear layers
    # with LayerNorm+ReLU between them (same structure as the previously
    # validated port).
    """

    def __init__(self, num_layers, in_channels, hid_channels, out_channels,
                 drop=0.0, norm='layer', sigmoid=False, bias=True, key=None,
                 compute_dtype=jnp.bfloat16):
        assert norm == 'layer', "only LayerNorm variant implemented"
        assert bias, "bias=True assumed"
        # TODO(synk): dropout is only exact for p=0 / eval mode (identity here).
        self.sigmoid = sigmoid
        self.drop = drop
        self.compute_dtype = compute_dtype
        key = key if key is not None else jax.random.PRNGKey(0)

        dims = ([(in_channels, out_channels)] if num_layers == 1 else
                [(in_channels, hid_channels)]
                + [(hid_channels, hid_channels)] * (num_layers - 2)
                + [(hid_channels, out_channels)])

        self.weights, self.biases = [], []
        for (cin, cout) in dims:
            key, kw, kb = jax.random.split(key, 3)
            bound = 1.0 / (cin ** 0.5)  # torch.nn.Linear default init range
            self.weights.append(
                jax.random.uniform(kw, (cin, cout), jnp.float32, -bound, bound))
            self.biases.append(
                jax.random.uniform(kb, (1, cout), jnp.float32, -bound, bound))

        self.gamma = jnp.ones((1, hid_channels), jnp.float32)
        self.beta = jnp.zeros((1, hid_channels), jnp.float32)

    def __call__(self, x, compute_dtype=None):
        cd = self.compute_dtype if compute_dtype is None else compute_dtype
        return fused_mlp_forward(x, self.weights, self.biases, self.gamma,
                                 self.beta, sigmoid=self.sigmoid,
                                 compute_dtype=cd)


def reference_forward(x, model):
    """Pure-JAX f32 reference for correctness checking."""
    h = x
    for w, b in zip(model.weights[:-1], model.biases[:-1]):
        h = h @ w + b
        mu = jnp.mean(h, axis=-1, keepdims=True)
        var = jnp.mean((h - mu) ** 2, axis=-1, keepdims=True)
        h = (h - mu) * jax.lax.rsqrt(var + LN_EPS) * model.gamma + model.beta
        h = jnp.maximum(h, 0.0)
    h = h @ model.weights[-1] + model.biases[-1]
    if model.sigmoid:
        h = jax.nn.sigmoid(h)
    if h.shape[-1] == 1:
        h = jnp.squeeze(h, axis=-1)
    return h


if __name__ == "__main__":
    key = jax.random.PRNGKey(0)
    kx, kp = jax.random.split(key)

    # small shapes: batch=8, in=16, hid=32, out=1 (so squeeze(-1) is exercised)
    N, CIN, CHID, COUT = 8, 16, 32, 1
    x = jax.random.normal(kx, (N, CIN), jnp.float32)

    model = KANLayer(num_layers=3, in_channels=CIN, hid_channels=CHID,
                     out_channels=COUT, drop=0.0, norm='layer',
                     sigmoid=True, bias=True, key=kp)

    y_ref = reference_forward(x, model)

    # f32 MXU path: must match the pure-JAX reference tightly.
    y_f32 = model(x, compute_dtype=jnp.float32)
    jax.block_until_ready(y_f32)
    assert y_f32.shape == (N,), y_f32.shape
    assert jnp.allclose(y_f32, y_ref, atol=1e-4, rtol=1e-4), \
        float(jnp.max(jnp.abs(y_f32 - y_ref)))

    # bf16 MXU path (default; v6e/v7x-native): loosened tolerance vs f32 ref.
    y_bf16 = model(x)
    jax.block_until_ready(y_bf16)
    assert y_bf16.shape == (N,), y_bf16.shape
    assert jnp.allclose(y_bf16, y_ref, atol=5e-2, rtol=5e-2), \
        float(jnp.max(jnp.abs(y_bf16 - y_ref)))

    print("KERNEL_OK")
</pallas_src>

<mosaic_0001>
module attributes {stable_mosaic.version = 11 : i64} {
  func.func @_fused_mlp_kernel(%arg0: i32, %arg1: memref<8x16xf32, #tpu.memory_space<vmem>>, %arg2: memref<16x32xf32, #tpu.memory_space<vmem>>, %arg3: memref<1x32xf32, #tpu.memory_space<vmem>>, %arg4: memref<32x32xf32, #tpu.memory_space<vmem>>, %arg5: memref<1x32xf32, #tpu.memory_space<vmem>>, %arg6: memref<32x1xf32, #tpu.memory_space<vmem>>, %arg7: memref<1x1xf32, #tpu.memory_space<vmem>>, %arg8: memref<1x32xf32, #tpu.memory_space<vmem>>, %arg9: memref<1x32xf32, #tpu.memory_space<vmem>>, %arg10: memref<8x1xf32, #tpu.memory_space<vmem>>) attributes {dimension_semantics = [#tpu.dimension_semantics<parallel>], iteration_bounds = array<i64: 1>, scalar_prefetch = 0 : i64, scratch_operands = 0 : i64, tpu.core_type = #tpu.core_type<tc>, window_params = [{transform_indices = @transform_0, window_bounds = array<i64: 8, 16>}, {pipeline_mode = #tpu.pipeline_mode<synchronous>, transform_indices = @transform_1, window_bounds = array<i64: 16, 32>}, {pipeline_mode = #tpu.pipeline_mode<synchronous>, transform_indices = @transform_2, window_bounds = array<i64: 1, 32>}, {pipeline_mode = #tpu.pipeline_mode<synchronous>, transform_indices = @transform_3, window_bounds = array<i64: 32, 32>}, {pipeline_mode = #tpu.pipeline_mode<synchronous>, transform_indices = @transform_4, window_bounds = array<i64: 1, 32>}, {pipeline_mode = #tpu.pipeline_mode<synchronous>, transform_indices = @transform_5, window_bounds = array<i64: 32, 1>}, {pipeline_mode = #tpu.pipeline_mode<synchronous>, transform_indices = @transform_6, window_bounds = array<i64: 1, 1>}, {pipeline_mode = #tpu.pipeline_mode<synchronous>, transform_indices = @transform_7, window_bounds = array<i64: 1, 32>}, {pipeline_mode = #tpu.pipeline_mode<synchronous>, transform_indices = @transform_8, window_bounds = array<i64: 1, 32>}, {transform_indices = @transform_9, window_bounds = array<i64: 8, 1>}]} {
    %c0 = arith.constant 0 : index
    %c0_0 = arith.constant 0 : index
    %0 = vector.load %arg8[%c0, %c0_0] : memref<1x32xf32, #tpu.memory_space<vmem>>, vector<1x32xf32>
    %c0_1 = arith.constant 0 : index
    %c0_2 = arith.constant 0 : index
    %1 = vector.load %arg9[%c0_1, %c0_2] : memref<1x32xf32, #tpu.memory_space<vmem>>, vector<1x32xf32>
    %c0_3 = arith.constant 0 : index
    %c0_4 = arith.constant 0 : index
    %2 = vector.load %arg1[%c0_3, %c0_4] : memref<8x16xf32, #tpu.memory_space<vmem>>, vector<8x16xf32>
    %c0_5 = arith.constant 0 : index
    %c0_6 = arith.constant 0 : index
    %3 = vector.load %arg2[%c0_5, %c0_6] : memref<16x32xf32, #tpu.memory_space<vmem>>, vector<16x32xf32>
    %c0_7 = arith.constant 0 : index
    %c0_8 = arith.constant 0 : index
    %4 = vector.load %arg3[%c0_7, %c0_8] : memref<1x32xf32, #tpu.memory_space<vmem>>, vector<1x32xf32>
    %cst = arith.constant dense<0.000000e+00> : vector<8x32xf32>
    %5 = tpu.matmul %2, %3, %cst {dimension_numbers = #tpu.dot_dimension_numbers<[1], [0], [0], [1], [0, 0, 1, 1], [], []>} : vector<8x16xf32>, vector<16x32xf32>, vector<8x32xf32> -> vector<8x32xf32>
    %6 = vector.broadcast %4 : vector<1x32xf32> to vector<8x32xf32>
    %7 = arith.addf %5, %6 : vector<8x32xf32>
    %cst_9 = arith.constant dense<0.000000e+00> : vector<8xf32>
    %8 = vector.multi_reduction <add>, %7, %cst_9 [1] : vector<8x32xf32> to vector<8xf32>
    %9 = vector.shape_cast %8 : vector<8xf32> to vector<8x1xf32>
    %cst_10 = arith.constant 3.200000e+01 : f32
    %10 = vector.broadcast %cst_10 : f32 to vector<8x1xf32>
    %11 = arith.divf %9, %10 : vector<8x1xf32>
    %12 = vector.broadcast %11 : vector<8x1xf32> to vector<8x32xf32>
    %13 = arith.subf %7, %12 : vector<8x32xf32>
    %14 = arith.mulf %13, %13 : vector<8x32xf32>
    %cst_11 = arith.constant dense<0.000000e+00> : vector<8xf32>
    %15 = vector.multi_reduction <add>, %14, %cst_11 [1] : vector<8x32xf32> to vector<8xf32>
    %16 = vector.shape_cast %15 : vector<8xf32> to vector<8x1xf32>
    %cst_12 = arith.constant 3.200000e+01 : f32
    %17 = vector.broadcast %cst_12 : f32 to vector<8x1xf32>
    %18 = arith.divf %16, %17 : vector<8x1xf32>
    %cst_13 = arith.constant 9.99999974E-6 : f32
    %19 = vector.broadcast %cst_13 : f32 to vector<8x1xf32>
    %20 = arith.addf %18, %19 : vector<8x1xf32>
    %21 = math.rsqrt %20 : vector<8x1xf32>
    %22 = vector.broadcast %21 : vector<8x1xf32> to vector<8x32xf32>
    %23 = arith.mulf %13, %22 : vector<8x32xf32>
    %24 = vector.broadcast %0 : vector<1x32xf32> to vector<8x32xf32>
    %25 = arith.mulf %23, %24 : vector<8x32xf32>
    %26 = vector.broadcast %1 : vector<1x32xf32> to vector<8x32xf32>
    %27 = arith.addf %25, %26 : vector<8x32xf32>
    %cst_14 = arith.constant 0.000000e+00 : f32
    %28 = vector.broadcast %cst_14 : f32 to vector<8x32xf32>
    %29 = arith.maximumf %27, %28 : vector<8x32xf32>
    %c0_15 = arith.constant 0 : index
    %c0_16 = arith.constant 0 : index
    %30 = vector.load %arg4[%c0_15, %c0_16] : memref<32x32xf32, #tpu.memory_space<vmem>>, vector<32x32xf32>
    %c0_17 = arith.constant 0 : index
    %c0_18 = arith.constant 0 : index
    %31 = vector.load %arg5[%c0_17, %c0_18] : memref<1x32xf32, #tpu.memory_space<vmem>>, vector<1x32xf32>
    %cst_19 = arith.constant dense<0.000000e+00> : vector<8x32xf32>
    %32 = tpu.matmul %29, %30, %cst_19 {dimension_numbers = #tpu.dot_dimension_numbers<[1], [0], [0], [1], [0, 0, 1, 1], [], []>} : vector<8x32xf32>, vector<32x32xf32>, vector<8x32xf32> -> vector<8x32xf32>
    %33 = vector.broadcast %31 : vector<1x32xf32> to vector<8x32xf32>
    %34 = arith.addf %32, %33 : vector<8x32xf32>
    %cst_20 = arith.constant dense<0.000000e+00> : vector<8xf32>
    %35 = vector.multi_reduction <add>, %34, %cst_20 [1] : vector<8x32xf32> to vector<8xf32>
    %36 = vector.shape_cast %35 : vector<8xf32> to vector<8x1xf32>
    %cst_21 = arith.constant 3.200000e+01 : f32
    %37 = vector.broadcast %cst_21 : f32 to vector<8x1xf32>
    %38 = arith.divf %36, %37 : vector<8x1xf32>
    %39 = vector.broadcast %38 : vector<8x1xf32> to vector<8x32xf32>
    %40 = arith.subf %34, %39 : vector<8x32xf32>
    %41 = arith.mulf %40, %40 : vector<8x32xf32>
    %cst_22 = arith.constant dense<0.000000e+00> : vector<8xf32>
    %42 = vector.multi_reduction <add>, %41, %cst_22 [1] : vector<8x32xf32> to vector<8xf32>
    %43 = vector.shape_cast %42 : vector<8xf32> to vector<8x1xf32>
    %cst_23 = arith.constant 3.200000e+01 : f32
    %44 = vector.broadcast %cst_23 : f32 to vector<8x1xf32>
    %45 = arith.divf %43, %44 : vector<8x1xf32>
    %cst_24 = arith.constant 9.99999974E-6 : f32
    %46 = vector.broadcast %cst_24 : f32 to vector<8x1xf32>
    %47 = arith.addf %45, %46 : vector<8x1xf32>
    %48 = math.rsqrt %47 : vector<8x1xf32>
    %49 = vector.broadcast %48 : vector<8x1xf32> to vector<8x32xf32>
    %50 = arith.mulf %40, %49 : vector<8x32xf32>
    %51 = vector.broadcast %0 : vector<1x32xf32> to vector<8x32xf32>
    %52 = arith.mulf %50, %51 : vector<8x32xf32>
    %53 = vector.broadcast %1 : vector<1x32xf32> to vector<8x32xf32>
    %54 = arith.addf %52, %53 : vector<8x32xf32>
    %cst_25 = arith.constant 0.000000e+00 : f32
    %55 = vector.broadcast %cst_25 : f32 to vector<8x32xf32>
    %56 = arith.maximumf %54, %55 : vector<8x32xf32>
    %c0_26 = arith.constant 0 : index
    %c0_27 = arith.constant 0 : index
    %57 = vector.load %arg6[%c0_26, %c0_27] : memref<32x1xf32, #tpu.memory_space<vmem>>, vector<32x1xf32>
    %c0_28 = arith.constant 0 : index
    %c0_29 = arith.constant 0 : index
    %58 = vector.load %arg7[%c0_28, %c0_29] : memref<1x1xf32, #tpu.memory_space<vmem>>, vector<1x1xf32>
    %cst_30 = arith.constant dense<0.000000e+00> : vector<8x1xf32>
    %59 = tpu.matmul %56, %57, %cst_30 {dimension_numbers = #tpu.dot_dimension_numbers<[1], [0], [0], [1], [0, 0, 1, 1], [], []>} : vector<8x32xf32>, vector<32x1xf32>, vector<8x1xf32> -> vector<8x1xf32>
    %60 = vector.broadcast %58 : vector<1x1xf32> to vector<8x1xf32>
    %61 = arith.addf %59, %60 : vector<8x1xf32>
    %62 = arith.negf %61 : vector<8x1xf32>
    %63 = math.exp %62 : vector<8x1xf32>
    %cst_31 = arith.constant 1.000000e+00 : f32
    %64 = vector.broadcast %cst_31 : f32 to vector<8x1xf32>
    %65 = arith.addf %64, %63 : vector<8x1xf32>
    %66 = arith.divf %64, %65 : vector<8x1xf32>
    %c0_32 = arith.constant 0 : index
    %c0_33 = arith.constant 0 : index
    %67 = vector.load %arg10[%c0_32, %c0_33] : memref<8x1xf32, #tpu.memory_space<vmem>>, vector<8x1xf32>
    tpu.vector_store %arg10[%c0_32, %c0_33], %66 {strides = array<i32>} : memref<8x1xf32, #tpu.memory_space<vmem>>, vector<8x1xf32>,
    return
  }
  func.func @transform_0(%arg0: i32) -> (i32, i32) {
    %c0_i32 = arith.constant 0 : i32
    %c0_i32_0 = arith.constant 0 : i32
    return %arg0, %c0_i32 : i32, i32
  }
  func.func @transform_1(%arg0: i32) -> (i32, i32) {
    %c0_i32 = arith.constant 0 : i32
    %c0_i32_0 = arith.constant 0 : i32
    %c0_i32_1 = arith.constant 0 : i32
    return %c0_i32, %c0_i32_0 : i32, i32
  }
  func.func @transform_2(%arg0: i32) -> (i32, i32) {
    %c0_i32 = arith.constant 0 : i32
    %c0_i32_0 = arith.constant 0 : i32
    %c0_i32_1 = arith.constant 0 : i32
    return %c0_i32, %c0_i32_0 : i32, i32
  }
  func.func @transform_3(%arg0: i32) -> (i32, i32) {
    %c0_i32 = arith.constant 0 : i32
    %c0_i32_0 = arith.constant 0 : i32
    %c0_i32_1 = arith.constant 0 : i32
    return %c0_i32, %c0_i32_0 : i32, i32
  }
  func.func @transform_4(%arg0: i32) -> (i32, i32) {
    %c0_i32 = arith.constant 0 : i32
    %c0_i32_0 = arith.constant 0 : i32
    %c0_i32_1 = arith.constant 0 : i32
    return %c0_i32, %c0_i32_0 : i32, i32
  }
  func.func @transform_5(%arg0: i32) -> (i32, i32) {
    %c0_i32 = arith.constant 0 : i32
    %c0_i32_0 = arith.constant 0 : i32
    %c0_i32_1 = arith.constant 0 : i32
    return %c0_i32, %c0_i32_0 : i32, i32
  }
  func.func @transform_6(%arg0: i32) -> (i32, i32) {
    %c0_i32 = arith.constant 0 : i32
    %c0_i32_0 = arith.constant 0 : i32
    %c0_i32_1 = arith.constant 0 : i32
    return %c0_i32, %c0_i32_0 : i32, i32
  }
  func.func @transform_7(%arg0: i32) -> (i32, i32) {
    %c0_i32 = arith.constant 0 : i32
    %c0_i32_0 = arith.constant 0 : i32
    %c0_i32_1 = arith.constant 0 : i32
    return %c0_i32, %c0_i32_0 : i32, i32
  }
  func.func @transform_8(%arg0: i32) -> (i32, i32) {
    %c0_i32 = arith.constant 0 : i32
    %c0_i32_0 = arith.constant 0 : i32
    %c0_i32_1 = arith.constant 0 : i32
    return %c0_i32, %c0_i32_0 : i32, i32
  }
  func.func @transform_9(%arg0: i32) -> (i32, i32) {
    %c0_i32 = arith.constant 0 : i32
    %c0_i32_0 = arith.constant 0 : i32
    return %arg0, %c0_i32 : i32, i32
  }
}

</mosaic_0001>

<bundles_post_ra>
// kernel: tpu_custom_call.1
= control target key start
LH: loop header
LB: loop body
LE: loop exit
PB: predicated region body
PF: predicated region fallthrough
CT: control target
= control target key end

     0   :  { %s435_s0 = inlined_call_operand.hbm [shape: f32[8,16], index: 0, kind: input, shape index: {}]   ;;  %s436_s1 = inlined_call_operand.hbm [shape: f32[16,32], index: 1, kind: input, shape index: {}]   ;;  %s437_s2 = inlined_call_operand.vmem [shape: f32[1,32], index: 2, kind: input, shape index: {}]   ;;  %s438_s3 = inlined_call_operand.vmem [shape: f32[32,32], index: 3, kind: input, shape index: {}]   ;;  %s439_s4 = inlined_call_operand.vmem [shape: f32[1,32], index: 4, kind: input, shape index: {}]   ;;  %s440_s5 = inlined_call_operand.vmem [shape: f32[32,1], index: 5, kind: input, shape index: {}]   ;;  %s441_s6 = inlined_call_operand.<no memory space> [shape: f32[1,1], index: 6, kind: input, shape index: {}]   ;;  %s442_s7 = inlined_call_operand.vmem [shape: f32[1,32], index: 7, kind: input, shape index: {}]   ;;  %s443_s8 = inlined_call_operand.vmem [shape: f32[1,32], index: 8, kind: input, shape index: {}]   ;;  %s444_s9 = inlined_call_operand.vmem [shape: f32[8,1], index: 9, kind: output, shape index: {}]  }
   0x1   :  { %v14_v0 = vstv %s441_s6 }
   0x2   :  { %15 = vst [vmem:[#allocation2] sm:$0x1] %v14_v0 }
   0x3   :  { %16 = vsyncpa [#allocation4], 0  ;;  %s23_s13 = sshll.u32 %s435_s0, 4  ;;  %s24_s13 = int_to_ptr.hbm [resolvable:$true] %s23_s13 }
   0x4   :  { %17 = vsyncpa [#allocation6], 0  ;;  %s326_s14 = smov [#allocation3]   ;;  %s33_s18 = sshll.u32 %s436_s1, 4  ;;  %s34_s18 = int_to_ptr.hbm [resolvable:$true] %s33_s18 }
   0x5   :  { %s25_s15 = sshll.u32 %s326_s14, 4  ;;  %s327_s19 = smov [#allocation5]   ;;  %s26_s15 = int_to_ptr.vmem [resolvable:$true] %s25_s15 }
   0x6   :  { %28 = dma.hbm_to_vmem [thread:$0]  %s24_s13, 128, %s26_s15, [#allocation4]  }
   0x7   :  { %s35_s20 = sshll.u32 %s327_s19, 4  ;;  %s328_s6 = smov 128   ;;  %s36_s20 = int_to_ptr.vmem [resolvable:$true] %s35_s20 }
   0x8   :  { %s329_s21 = smov 8  }
   0x9   :  { %41 = dma.hbm_to_vmem [thread:$0]  %s34_s18, 256, %s36_s20, [#allocation6], %s328_s6, %s328_s6, %s329_s21  }
   0xa   :  { %322 = dma.done.wait [#allocation4], 128  }
   0xb   :  { %323 = vsyncadd [#allocation4], 4294967168 }
   0xc   :  { %324 = dma.done.wait [#allocation6], 256  }
   0xd   :  { %325 = vsyncadd [#allocation6], 4294967040  ;;  %v68_v1 = vld [vmem:[#allocation5 + $0x8] sm:$0xff]  ;;  %v67_v2 = vld [vmem:[#allocation5] sm:$0xff]  ;;  %vm73_vm0 = vcmask 130048   ;;  %vm97_vm1 = vcmask 261120  }
   0xe   :  { %91 = vmatpush.msra.mxu0 %v68_v1  ;;  %v66_v3 = vld [vmem:[#allocation3] sm:$0xff]  ;;  %v259_v4 = vld [vmem:[%s437_s2] ss:$0 sm:$0xff]  ;;  %v330_v8 = vmov 32.0   ;;  %v139_v20 = vld [vmem:[%s438_s3 + $0x18] sm:$0xff]  ;;  %vm242_vm12 = vcmask 7168  }
   0xf   :  { %264 = vrcp.f32 %v330_v8  ;;  %v138_v21 = vld [vmem:[%s438_s3 + $0x10] sm:$0xff]  ;;  %159 = vmatpush.msra.mxu1 %v139_v20  ;;  %v137_v22 = vld [vmem:[%s438_s3 + $0x8] sm:$0xff]  ;;  %v136_v23 = vld [vmem:[%s438_s3] sm:$0xff] }
  0x10   :  { %92 = vmatpush.msra.mxu0 %v67_v2  ;;  %v260_v33 = vld [vmem:[%s442_s7] ss:$0 sm:$0xff]  ;;  %v195_v49 = vld [vmem:[%s440_s5 + $0x18] sm:$0xff]  ;;  %v194_v50 = vld [vmem:[%s440_s5 + $0x10] sm:$0xff] }
  0x11   :  { %250 = vmatmul.msk.f32.vlgmr.msra.gmra.mxu0 %vm73_vm0, %v66_v3  ;;  %160 = vmatpush.msra.mxu1 %v138_v21  ;;  %v261_v36 = vld [vmem:[%s443_s8] ss:$0 sm:$0xff]  ;;  %v193_v51 = vld [vmem:[%s440_s5 + $0x8] sm:$0xff] }
  0x12   :  { %v262_v40 = vld [vmem:[%s439_s4] ss:$0 sm:$0xff]  ;;  %215 = vmatpush.msra.mxu2 %v195_v49 }
  0x13   :  { %161 = vmatpush.msra.mxu1 %v137_v22  ;;  %v192_v52 = vld [vmem:[%s440_s5] sm:$0xff] }
  0x14   :  { %216 = vmatpush.msra.mxu2 %v194_v50  ;;  %v263_v3 = vld [vmem:[#allocation2] ss:$0 sm:$0xff] }
  0x15   :  { %v265_v9 = vpop.eup %264  ;;  %162 = vmatpush.msra.mxu1 %v136_v23 }
  0x16   :  { %v102_v10 = vmul.f32 32.0, %v265_v9  ;;  %vm106_vm2 = vweird.f32 %v265_v9  ;;  %217 = vmatpush.msra.mxu2 %v193_v51 }
  0x18   :  { %v103_v11 = vsub.f32 1.0, %v102_v10  ;;  %218 = vmatpush.msra.mxu2 %v192_v52 }
  0x1a   :  { %v104_v12 = vmul.f32 %v265_v9, %v103_v11 }
  0x1c   :  { %v105_v13 = vadd.f32 %v265_v9, %v104_v12 }
  0x1e   :  { %v107_v14 = vsel %vm106_vm2, %v265_v9, %v105_v13 }
  0x8e   :  { %v94_v5 = vpop.f32.mrf.mxu0 }
  0x8f   :  { %v95_v6 = vadd.f32 %v259_v4, %v94_v5 }
  0x91   :  { %v98_v7 = vsel %vm97_vm1, %v95_v6, 0.0 }
  0x92   :  { %99 = vadd.xlane.f32.xlu0 %v98_v7 }
 0x105   :  { %v100_v15 = vpop.xlane.xlu0 %99 }
 0x106   :  { %v108_v16 = vmul.f32 %v107_v14, %v100_v15 }
 0x108   :  { %v109_v17 = vsub.f32 %v95_v6, %v108_v16 }
 0x10a   :  { %v110_v18 = vmul.f32 %v109_v17, %v109_v17 }
 0x10c   :  { %v111_v19 = vsel %vm97_vm1, %v110_v18, 0.0 }
 0x10d   :  { %112 = vadd.xlane.f32.xlu0 %v111_v19 }
 0x180   :  { %v113_v24 = vpop.xlane.xlu0 %112 }
 0x181   :  { %v114_v25 = vmul.f32 %v113_v24, %v107_v14 }
 0x183   :  { %v115_v26 = vadd.f32 1e-05, %v114_v25 }
 0x185   :  { %266 = vrsqrt.f32 %v115_v26  ;;  %vm122_vm4 = vweird.f32 %v115_v26 }
 0x18b   :  { %v267_v27 = vpop.eup %266 }
 0x18c   :  { %v117_v28 = vmul.f32 %v267_v27, %v115_v26  ;;  %vm123_vm3 = vweird.f32 %v267_v27 }
 0x18d   :  { %vm124_vm5 = vmor %vm122_vm4, %vm123_vm3 }
 0x18e   :  { %v118_v29 = vmul.f32 %v267_v27, %v117_v28 }
 0x190   :  { %v119_v30 = vmul.f32 0.5, %v118_v29 }
 0x192   :  { %v120_v31 = vsub.f32 1.5, %v119_v30 }
 0x194   :  { %v121_v32 = vmul.f32 %v267_v27, %v120_v31 }
 0x196   :  { %v125_v34 = vsel %vm124_vm5, %v267_v27, %v121_v32 }
 0x197   :  { %v126_v35 = vmul.f32 %v125_v34, %v109_v17 }
 0x199   :  { %v130_v37 = vmul.f32 %v260_v33, %v126_v35 }
 0x19b   :  { %v134_v38 = vadd.f32 %v261_v36, %v130_v37 }
 0x19d   :  { %v135_v39 = vmax.f32 %v134_v38, 0.0 }
 0x19f   :  { %251 = vmatmul.msk.f32.vlgmr.msra.gmra.mxu1 %vm97_vm1, %v135_v39 }
 0x21c   :  { %v164_v41 = vpop.f32.mrf.mxu1 }
 0x21d   :  { %v165_v42 = vadd.f32 %v262_v40, %v164_v41 }
 0x21f   :  { %v167_v43 = vsel %vm97_vm1, %v165_v42, 0.0 }
 0x220   :  { %168 = vadd.xlane.f32.xlu1 %v167_v43 }
 0x293   :  { %v169_v44 = vpop.xlane.xlu1 %168 }
 0x294   :  { %v170_v45 = vmul.f32 %v169_v44, %v107_v14 }
 0x296   :  { %v171_v46 = vsub.f32 %v165_v42, %v170_v45 }
 0x298   :  { %v172_v47 = vmul.f32 %v171_v46, %v171_v46 }
 0x29a   :  { %v173_v48 = vsel %vm97_vm1, %v172_v47, 0.0 }
 0x29b   :  { %174 = vadd.xlane.f32.xlu1 %v173_v48 }
 0x30e   :  { %v175_v53 = vpop.xlane.xlu1 %174 }
 0x30f   :  { %v176_v54 = vmul.f32 %v175_v53, %v107_v14 }
 0x311   :  { %v177_v55 = vadd.f32 1e-05, %v176_v54 }
 0x313   :  { %268 = vrsqrt.f32 %v177_v55  ;;  %vm184_vm7 = vweird.f32 %v177_v55 }
 0x319   :  { %v269_v56 = vpop.eup %268 }
 0x31a   :  { %v179_v57 = vmul.f32 %v269_v56, %v177_v55  ;;  %vm185_vm6 = vweird.f32 %v269_v56 }
 0x31b   :  { %vm186_vm8 = vmor %vm184_vm7, %vm185_vm6 }
 0x31c   :  { %v180_v58 = vmul.f32 %v269_v56, %v179_v57 }
 0x31e   :  { %v181_v59 = vmul.f32 0.5, %v180_v58 }
 0x320   :  { %v182_v60 = vsub.f32 1.5, %v181_v59 }
 0x322   :  { %v183_v61 = vmul.f32 %v269_v56, %v182_v60 }
 0x324   :  { %v187_v62 = vsel %vm186_vm8, %v269_v56, %v183_v61 }
 0x325   :  { %v188_v63 = vmul.f32 %v187_v62, %v171_v46 }
 0x327   :  { %v189_v0 = vmul.f32 %v260_v33, %v188_v63 }
 0x329   :  { %v190_v1 = vadd.f32 %v261_v36, %v189_v0 }
 0x32b   :  { %v191_v2 = vmax.f32 %v190_v1, 0.0 }
 0x32d   :  { %252 = vmatmul.msk.f32.vlgmr.msra.gmra.mxu2 %vm97_vm1, %v191_v2 }
 0x3b0   :  { %v220_v4 = vpop.f32.mrf.mxu2 }
 0x3b1   :  { %v221_v5 = vadd.f32 %v263_v3, %v220_v4 }
 0x3b3   :  { %v253_v6 = vmul.f32 -1.442695, %v221_v5 }
 0x3b5   :  { %270 = vpow2.f32 %v253_v6 }
 0x3bb   :  { %v271_v7 = vpop.eup %270 }
 0x3bc   :  { %v226_v8 = vadd.f32 1.0, %v271_v7 }
 0x3be   :  { %272 = vrcp.f32 %v226_v8  ;;  %v238_v12 = vand.u32 2147483648, %v226_v8  ;;  %v236_v14 = vand.u32 2147483647, %v226_v8  ;;  %vm232_vm10 = vweird.f32 %v226_v8 }
 0x3c0   :  { %v239_v16 = vor.u32 1.1754944e-38, %v238_v12  ;;  %vm237_vm13 = vcmp.eq.f32.partialorder %v236_v14, 8.507059e+37 }
 0x3c4   :  { %v273_v9 = vpop.eup %272 }
 0x3c5   :  { %v228_v10 = vmul.f32 %v273_v9, %v226_v8  ;;  %vm233_vm9 = vweird.f32 %v273_v9 }
 0x3c6   :  { %vm234_vm11 = vmor %vm232_vm10, %vm233_vm9 }
 0x3c7   :  { %v229_v11 = vsub.f32 1.0, %v228_v10 }
 0x3c9   :  { %v230_v13 = vmul.f32 %v273_v9, %v229_v11 }
 0x3cb   :  { %v231_v15 = vadd.f32 %v273_v9, %v230_v13 }
 0x3cd   :  { %v235_v17 = vsel %vm234_vm11, %v273_v9, %v231_v15 }
 0x3ce   :  { %v240_v18 = vsel %vm237_vm13, %v239_v16, %v235_v17 }
 0x3cf   :  { %243 = vst.msk [vmem:[%s444_s9] sm:$0xff] %vm242_vm12, %v240_v18 }
 0x3d0   :  { %248 = vsyncpa [#allocation4], 1 }
 0x3d1   :  { %249 = vsyncpa [#allocation6], 1 }

</bundles_post_ra>
